<compile_context>
chip_gen: v7x
topology: tpu7x:2x2x1
jax: 0.10.0
libtpu: 0.0.40
codegen_flags: <defaults>
</compile_context>

<pallas_src>
import functools

import jax
import jax.numpy as jnp
from jax.experimental import pallas as pl
from jax.experimental.pallas import tpu as pltpu

HIDDEN = 768        # roberta hidden size (Linear(768, 512))
MID = 512
MAXLEN = 8          # args.MAXLEN (small demo value)
NUM_CLASSES = 4
BATCH = 2

# Per-buffer cap for the hidden-state block: double-buffered this stays far below v7x's
# 64 MiB VMEM (and is tiny next to v5e/v6e's 128 MiB).
_H_BLOCK_BYTE_CAP = 8 * 1024 * 1024
# Target M rows per MXU matmul: 256 fills the v6e/v7x 2x256x256 MXU; >=128 covers v5e.
_TARGET_ROWS = 256


def _pick_batch_block(B, L, H, bytes_per_elem):
    """Samples per grid step: fill the MXU M dimension without blowing the VMEM budget."""
    best = 1
    for bb in range(1, B + 1):
        if B % bb:
            continue
        if bb * L * H * bytes_per_elem > _H_BLOCK_BYTE_CAP:
            break
        best = bb
        if bb * L >= _TARGET_ROWS:
            break
    return best


def _tltcp_head_kernel(h_ref, w1_ref, b1_ref, w2_ref, b2_ref, w3_ref, b3_ref,
                       out_ref):
    """cls_fc_1 (Linear+ReLU+Linear+ReLU) + squeeze + cls_fc_2 for one block of samples."""
    rows, _ = h_ref.shape          # rows = bb * L  (flattened batch-block rows)
    bb, C = out_ref.shape
    L = rows // bb

    # In-kernel bf16 cast of the already-VMEM-resident hidden block (no extra HBM pass);
    # w1 is stored bf16, so the MXU runs bf16 x bf16 with f32 accumulation.
    h = h_ref[...].astype(jnp.bfloat16)                                    # (rows, H)
    w1 = w1_ref[...]                                                       # (H, MID) bf16
    b1 = b1_ref[...]                                                       # (1, MID) f32
    w2r = w2_ref[...]                                                      # (1, MID) f32
    b2 = b2_ref[...]                                                       # (1, 1)   f32
    w3 = w3_ref[...]                                                       # (L, C)   f32
    b3 = b3_ref[...]                                                       # (1, C)   f32

    # Linear(768, 512) + ReLU: one merged MXU matmul over the whole block.
    u = jnp.maximum(
        jnp.dot(h, w1, preferred_element_type=jnp.float32) + b1, 0.0)      # (rows, MID) f32
    # Linear(512, 1) + ReLU: broadcast-multiply + lane reduction (skip degenerate N=1 matmul).
    s = jnp.maximum(jnp.sum(u * w2r, axis=1, keepdims=True) + b2, 0.0)     # (rows, 1) f32
    # .squeeze() + Linear(MAXLEN, C): logits[b, c] = sum_l s[b*L + l] * w3[l, c] + b3[c]
    s3 = s.reshape(bb, L, 1)                                               # leading-dim split (free)
    logits = jnp.sum(s3 * w3[None, :, :], axis=1) + b3                     # (bb, C) f32
    out_ref[...] = logits                                                  # one store per step


@functools.partial(jax.jit, static_argnames=("batch_block",))
def tltcp_forward(hidden_states, params, *, batch_block=None):
    """Eval-mode TLTCPModel.forward on a precomputed roberta last hidden state."""
    w1, b1, w2r, b2, w3, b3 = params
    B, L, H = hidden_states.shape
    MIDp = w1.shape[1]
    C = w3.shape[1]

    bb = batch_block if batch_block is not None else _pick_batch_block(
        B, L, H, hidden_states.dtype.itemsize)
    assert B % bb == 0, "batch must be divisible by batch_block (pad ragged batches)"
    G = B // bb
    rows_block = bb * L

    # Flatten (B, L, H) -> (B*L, H): free in XLA, yields lane/sublane-aligned 2-D row tiles.
    h2d = hidden_states.reshape(B * L, H)

    const2 = lambda i: (0, 0)
    logits_blocks = pl.pallas_call(
        _tltcp_head_kernel,
        out_shape=jax.ShapeDtypeStruct((G, bb, C), jnp.float32),
        grid=(G,),
        in_specs=[
            pl.BlockSpec((rows_block, H), lambda i: (i, 0)),  # hidden rows, tiled over batch blocks
            pl.BlockSpec((H, MIDp), const2),                  # w1 (bf16): constant index -> VMEM-resident
            pl.BlockSpec((1, MIDp), const2),                  # b1
            pl.BlockSpec((1, MIDp), const2),                  # w2 (row)
            pl.BlockSpec((1, 1), const2),                     # b2
            pl.BlockSpec((L, C), const2),                     # w3
            pl.BlockSpec((1, C), const2),                     # b3
        ],
        # Squeezed leading dim -> kernel writes a plain (bb, C) block.
        out_specs=pl.BlockSpec((None, bb, C), lambda i: (i, 0, 0)),
        compiler_params=pltpu.CompilerParams(
            dimension_semantics=("parallel",),                # batch blocks split across TCs (v7x)
            vmem_limit_bytes=48 * 1024 * 1024,                # > v5e's 16 MiB default, < v7x's 64 MiB physical
        ),
    )(h2d, w1, b1, w2r, b2, w3, b3)
    logits = logits_blocks.reshape(B, C)

    # Eval mode: mmd_loss = cond_loss = 0 (training-only MMD terms are not part of inference).
    mmd_loss = jnp.float32(0.0)
    cond_loss = jnp.float32(0.0)
    return logits, mmd_loss, cond_loss


def init_params(key):
    """Deterministic init matching the PyTorch Linear shapes (weights stored pre-transposed)."""
    ks = jax.random.split(key, 6)

    def lin(kw, kb, fan_in, fan_out, w_shape):
        bound = 1.0 / jnp.sqrt(jnp.float32(fan_in))
        w = jax.random.uniform(kw, w_shape, jnp.float32, -bound, bound)
        b = jax.random.uniform(kb, (1, fan_out), jnp.float32, -bound, bound)
        return w, b

    w1, b1 = lin(ks[0], ks[1], HIDDEN, MID, (HIDDEN, MID))       # Linear(768, 512)  (W^T)
    w2r, b2 = lin(ks[2], ks[3], MID, 1, (1, MID))                # Linear(512, 1)    (W as row)
    w3, b3 = lin(ks[4], ks[5], MAXLEN, NUM_CLASSES,
                 (MAXLEN, NUM_CLASSES))                          # Linear(MAXLEN, C) (W^T)
    # Cast w1 to bf16 once at model-load time: avoids a per-forward convert + HBM round trip;
    # the kernel accumulates in f32 so the epilogue numerics are unchanged.
    return (w1.astype(jnp.bfloat16), b1, w2r, b2, w3, b3)


def reference(h, params):
    """Pure-JAX reference with the same bf16-input / f32-accumulate numerics as the kernel."""
    w1, b1, w2r, b2, w3, b3 = params
    hq = h.astype(jnp.bfloat16).astype(jnp.float32)
    w1q = w1.astype(jnp.float32)
    u = jnp.maximum(
        jnp.einsum("blh,hm->blm", hq, w1q,
                   precision=jax.lax.Precision.HIGHEST) + b1, 0.0)   # (B, L, MID)
    s = jnp.maximum(u @ jnp.transpose(w2r) + b2, 0.0)                # (B, L, 1)
    y = s[..., 0]                                                    # squeeze -> (B, L)
    return y @ w3 + b3                                               # (B, C)


if __name__ == "__main__":
    key = jax.random.PRNGKey(0)
    k_h, k_p = jax.random.split(key)

    # Synthetic stand-in for roberta(...).hidden_states[-1]  (see TODO(synk) above).
    hidden = jax.random.normal(k_h, (BATCH, MAXLEN, HIDDEN), jnp.float32)
    params = init_params(k_p)

    logits, mmd_loss, cond_loss = tltcp_forward(hidden, params)
    logits = jax.block_until_ready(logits)

    assert logits.shape == (BATCH, NUM_CLASSES)
    ref = reference(hidden, params)
    assert jnp.allclose(logits, ref, rtol=1e-2, atol=1e-2), "kernel/reference mismatch"
    assert float(mmd_loss) == 0.0 and float(cond_loss) == 0.0

    print("KERNEL_OK")
</pallas_src>

<mosaic_0001>
module attributes {stable_mosaic.version = 11 : i64} {
  func.func @_tltcp_head_kernel(%arg0: i32, %arg1: memref<16x768xf32, #tpu.memory_space<vmem>>, %arg2: memref<768x512xbf16, #tpu.memory_space<vmem>>, %arg3: memref<1x512xf32, #tpu.memory_space<vmem>>, %arg4: memref<1x512xf32, #tpu.memory_space<vmem>>, %arg5: memref<1x1xf32, #tpu.memory_space<vmem>>, %arg6: memref<8x4xf32, #tpu.memory_space<vmem>>, %arg7: memref<1x4xf32, #tpu.memory_space<vmem>>, %arg8: memref<1x2x4xf32, #tpu.memory_space<vmem>>) attributes {dimension_semantics = [#tpu.dimension_semantics<parallel>], iteration_bounds = array<i64: 1>, scalar_prefetch = 0 : i64, scratch_operands = 0 : i64, tpu.core_type = #tpu.core_type<tc>, window_params = [{transform_indices = @transform_0, window_bounds = array<i64: 16, 768>}, {pipeline_mode = #tpu.pipeline_mode<synchronous>, transform_indices = @transform_1, window_bounds = array<i64: 768, 512>}, {pipeline_mode = #tpu.pipeline_mode<synchronous>, transform_indices = @transform_2, window_bounds = array<i64: 1, 512>}, {pipeline_mode = #tpu.pipeline_mode<synchronous>, transform_indices = @transform_3, window_bounds = array<i64: 1, 512>}, {pipeline_mode = #tpu.pipeline_mode<synchronous>, transform_indices = @transform_4, window_bounds = array<i64: 1, 1>}, {pipeline_mode = #tpu.pipeline_mode<synchronous>, transform_indices = @transform_5, window_bounds = array<i64: 8, 4>}, {pipeline_mode = #tpu.pipeline_mode<synchronous>, transform_indices = @transform_6, window_bounds = array<i64: 1, 4>}, {transform_indices = @transform_7, window_bounds = array<i64: 1, 2, 4>}]} {
    %c0 = arith.constant 0 : index
    %c0_0 = arith.constant 0 : index
    %0 = vector.load %arg1[%c0, %c0_0] : memref<16x768xf32, #tpu.memory_space<vmem>>, vector<16x768xf32>
    %1 = arith.truncf %0 : vector<16x768xf32> to vector<16x768xbf16>
    %c0_1 = arith.constant 0 : index
    %c0_2 = arith.constant 0 : index
    %2 = vector.load %arg2[%c0_1, %c0_2] : memref<768x512xbf16, #tpu.memory_space<vmem>>, vector<768x512xbf16>
    %c0_3 = arith.constant 0 : index
    %c0_4 = arith.constant 0 : index
    %3 = vector.load %arg3[%c0_3, %c0_4] : memref<1x512xf32, #tpu.memory_space<vmem>>, vector<1x512xf32>
    %c0_5 = arith.constant 0 : index
    %c0_6 = arith.constant 0 : index
    %4 = vector.load %arg4[%c0_5, %c0_6] : memref<1x512xf32, #tpu.memory_space<vmem>>, vector<1x512xf32>
    %c0_7 = arith.constant 0 : index
    %c0_8 = arith.constant 0 : index
    %5 = vector.load %arg5[%c0_7, %c0_8] : memref<1x1xf32, #tpu.memory_space<vmem>>, vector<1x1xf32>
    %c0_9 = arith.constant 0 : index
    %c0_10 = arith.constant 0 : index
    %6 = vector.load %arg6[%c0_9, %c0_10] : memref<8x4xf32, #tpu.memory_space<vmem>>, vector<8x4xf32>
    %c0_11 = arith.constant 0 : index
    %c0_12 = arith.constant 0 : index
    %7 = vector.load %arg7[%c0_11, %c0_12] : memref<1x4xf32, #tpu.memory_space<vmem>>, vector<1x4xf32>
    %cst = arith.constant dense<0.000000e+00> : vector<16x512xf32>
    %8 = tpu.matmul %1, %2, %cst {dimension_numbers = #tpu.dot_dimension_numbers<[1], [0], [0], [1], [0, 0, 1, 1], [], []>} : vector<16x768xbf16>, vector<768x512xbf16>, vector<16x512xf32> -> vector<16x512xf32>
    %9 = vector.broadcast %3 : vector<1x512xf32> to vector<16x512xf32>
    %10 = arith.addf %8, %9 : vector<16x512xf32>
    %cst_13 = arith.constant 0.000000e+00 : f32
    %11 = vector.broadcast %cst_13 : f32 to vector<16x512xf32>
    %12 = arith.maximumf %10, %11 : vector<16x512xf32>
    %13 = vector.broadcast %4 : vector<1x512xf32> to vector<16x512xf32>
    %14 = arith.mulf %12, %13 : vector<16x512xf32>
    %cst_14 = arith.constant dense<0.000000e+00> : vector<16xf32>
    %15 = vector.multi_reduction <add>, %14, %cst_14 [1] : vector<16x512xf32> to vector<16xf32>
    %16 = vector.shape_cast %15 : vector<16xf32> to vector<16x1xf32>
    %17 = vector.broadcast %5 : vector<1x1xf32> to vector<16x1xf32>
    %18 = arith.addf %16, %17 : vector<16x1xf32>
    %cst_15 = arith.constant 0.000000e+00 : f32
    %19 = vector.broadcast %cst_15 : f32 to vector<16x1xf32>
    %20 = arith.maximumf %18, %19 : vector<16x1xf32>
    %21 = vector.shape_cast %20 : vector<16x1xf32> to vector<2x8x1xf32>
    %22 = vector.shape_cast %6 : vector<8x4xf32> to vector<1x8x4xf32>
    %23 = vector.broadcast %21 : vector<2x8x1xf32> to vector<2x8x4xf32>
    %24 = vector.broadcast %22 : vector<1x8x4xf32> to vector<2x8x4xf32>
    %25 = arith.mulf %23, %24 : vector<2x8x4xf32>
    %cst_16 = arith.constant dense<0.000000e+00> : vector<2x4xf32>
    %26 = vector.multi_reduction <add>, %25, %cst_16 [1] : vector<2x8x4xf32> to vector<2x4xf32>
    %27 = vector.broadcast %7 : vector<1x4xf32> to vector<2x4xf32>
    %28 = arith.addf %26, %27 : vector<2x4xf32>
    %c0_17 = arith.constant 0 : index
    %c0_18 = arith.constant 0 : index
    %c0_19 = arith.constant 0 : index
    %29 = vector.load %arg8[%c0_17, %c0_18, %c0_19] : memref<1x2x4xf32, #tpu.memory_space<vmem>>, vector<1x2x4xf32>
    %30 = vector.shape_cast %29 : vector<1x2x4xf32> to vector<2x4xf32>
    %31 = vector.shape_cast %28 : vector<2x4xf32> to vector<1x2x4xf32>
    tpu.vector_store %arg8[%c0_17, %c0_18, %c0_19], %31 {strides = array<i32>} : memref<1x2x4xf32, #tpu.memory_space<vmem>>, vector<1x2x4xf32>,
    return
  }
  func.func @transform_0(%arg0: i32) -> (i32, i32) {
    %c0_i32 = arith.constant 0 : i32
    %c0_i32_0 = arith.constant 0 : i32
    return %arg0, %c0_i32 : i32, i32
  }
  func.func @transform_1(%arg0: i32) -> (i32, i32) {
    %c0_i32 = arith.constant 0 : i32
    %c0_i32_0 = arith.constant 0 : i32
    %c0_i32_1 = arith.constant 0 : i32
    return %c0_i32, %c0_i32_0 : i32, i32
  }
  func.func @transform_2(%arg0: i32) -> (i32, i32) {
    %c0_i32 = arith.constant 0 : i32
    %c0_i32_0 = arith.constant 0 : i32
    %c0_i32_1 = arith.constant 0 : i32
    return %c0_i32, %c0_i32_0 : i32, i32
  }
  func.func @transform_3(%arg0: i32) -> (i32, i32) {
    %c0_i32 = arith.constant 0 : i32
    %c0_i32_0 = arith.constant 0 : i32
    %c0_i32_1 = arith.constant 0 : i32
    return %c0_i32, %c0_i32_0 : i32, i32
  }
  func.func @transform_4(%arg0: i32) -> (i32, i32) {
    %c0_i32 = arith.constant 0 : i32
    %c0_i32_0 = arith.constant 0 : i32
    %c0_i32_1 = arith.constant 0 : i32
    return %c0_i32, %c0_i32_0 : i32, i32
  }
  func.func @transform_5(%arg0: i32) -> (i32, i32) {
    %c0_i32 = arith.constant 0 : i32
    %c0_i32_0 = arith.constant 0 : i32
    %c0_i32_1 = arith.constant 0 : i32
    return %c0_i32, %c0_i32_0 : i32, i32
  }
  func.func @transform_6(%arg0: i32) -> (i32, i32) {
    %c0_i32 = arith.constant 0 : i32
    %c0_i32_0 = arith.constant 0 : i32
    %c0_i32_1 = arith.constant 0 : i32
    return %c0_i32, %c0_i32_0 : i32, i32
  }
  func.func @transform_7(%arg0: i32) -> (i32, i32, i32) {
    %c0_i32 = arith.constant 0 : i32
    %c0_i32_0 = arith.constant 0 : i32
    %c0_i32_1 = arith.constant 0 : i32
    return %arg0, %c0_i32, %c0_i32_0 : i32, i32, i32
  }
}

</mosaic_0001>

<bundles_post_ra>
// kernel: tltcp_forward.1
= control target key start
LH: loop header
LB: loop body
LE: loop exit
PB: predicated region body
PF: predicated region fallthrough
CT: control target
= control target key end

     0   :  { %s2314_s0 = inlined_call_operand.hbm [shape: f32[16,768], index: 0, kind: input, shape index: {}]   ;;  %s2315_s1 = inlined_call_operand.hbm [shape: bf16[768,512], index: 1, kind: input, shape index: {}]   ;;  %s2316_s2 = inlined_call_operand.vmem [shape: f32[1,512], index: 2, kind: input, shape index: {}]   ;;  %s2317_s3 = inlined_call_operand.vmem [shape: f32[1,512], index: 3, kind: input, shape index: {}]   ;;  %s2318_s4 = inlined_call_operand.<no memory space> [shape: f32[1,1], index: 4, kind: input, shape index: {}]   ;;  %s2319_s5 = inlined_call_operand.vmem [shape: f32[8,4], index: 5, kind: input, shape index: {}]   ;;  %s2320_s6 = inlined_call_operand.vmem [shape: f32[1,4], index: 6, kind: input, shape index: {}]   ;;  %s2321_s7 = inlined_call_operand.hbm [shape: f32[1,2,4], index: 7, kind: output, shape index: {}]  }
   0x1   :  { %v12_v0 = vstv %s2318_s4 }
   0x2   :  { %13 = vst [vmem:[#allocation2] sm:$0x1] %v12_v0 }
   0x3   :  { %14 = vsyncpa [#allocation4], 0 }
   0x4   :  { %15 = vsyncpa [#allocation7], 0 }
   0x5   :  { %16 = vsyncpa [#allocation5], 0  ;;  %s2215_s26 = smov [#allocation3]   ;;  %s2143_s30 = scalar_lea.hbm %s2314_s0, 1536 }
   0x6   :  { %s22_s27 = sshll.u32 %s2215_s26, 4  ;;  %p2144_p0 = scmp.ne.s32.totalorder %s2314_s0, %s2143_s30  ;;  %s23_s27 = int_to_ptr.vmem [resolvable:$true] %s22_s27 }
   0x7   :  { %p2147_p1 = scmp.lt.u32.totalorder %s2143_s30, %s2314_s0 }
   0x9   :  { %p2149_p2 = pnand %p2147_p1, %p2144_p0 }
   0xb   :  { %2152 = shalt.err (!%p2149_p2)
}
   0xc   :  { %s2153_s4 = scalar_lea.vmem %s23_s27, 1536  ;;  %p2158_p4 = scmp.lt.s32.totalorder %s23_s27, %s23_s27 }
   0xd   :  { %p2154_p3 = scmp.ne.s32.totalorder %s23_s27, %s2153_s4  ;;  %p2159_p5 = scmp.lt.s32.totalorder %s2153_s4, %s2153_s4 }
   0xf   :  { %p2160_p6 = por %p2159_p5, %p2158_p4 }
  0x11   :  { %p2161_p7 = pnand %p2160_p6, %p2154_p3 }
  0x13   :  { %2164 = shalt.err (!%p2161_p7)
}
  0x14   :  { %s2216_s12 = smov 768   ;;  %s2217_s13 = smov 48  }
  0x15   :  { %28 = dma.hbm_to_vmem [thread:$0]  %s2314_s0, 1536, %s23_s27, [#allocation4], %s2216_s12, %s2216_s12, %s2217_s13  }
  0x16   :  { %s2218_s16 = smov [#allocation6]   ;;  %s2165_s20 = scalar_lea.hbm %s2315_s1, 24576 }
  0x17   :  { %s34_s17 = sshll.u32 %s2218_s16, 4  ;;  %p2166_p8 = scmp.ne.s32.totalorder %s2315_s1, %s2165_s20  ;;  %s35_s17 = int_to_ptr.vmem [resolvable:$true] %s34_s17 }
  0x18   :  { %p2169_p9 = scmp.lt.u32.totalorder %s2165_s20, %s2315_s1 }
  0x1a   :  { %p2171_p10 = pnand %p2169_p9, %p2166_p8 }
  0x1c   :  { %2174 = shalt.err (!%p2171_p10)
}
  0x1d   :  { %s2175_s25 = scalar_lea.vmem %s35_s17, 24576  ;;  %p2180_p12 = scmp.lt.s32.totalorder %s35_s17, %s35_s17 }
  0x1e   :  { %p2176_p11 = scmp.ne.s32.totalorder %s35_s17, %s2175_s25  ;;  %p2181_p13 = scmp.lt.s32.totalorder %s2175_s25, %s2175_s25 }
  0x20   :  { %p2182_p0 = por %p2181_p13, %p2180_p12 }
  0x22   :  { %p2183_p1 = pnand %p2182_p0, %p2176_p11 }
  0x24   :  { %2186 = shalt.err (!%p2183_p1)
}
  0x25   :  { %s2219_s0 = smov 256   ;;  %s2220_s26 = smov 16  }
  0x26   :  { %40 = dma.hbm_to_vmem [thread:$0]  %s2315_s1, 24576, %s35_s17, [#allocation7], %s2219_s0, %s2219_s0, %s2220_s26  }
  0x27   :  { %2209 = dma.done.wait [#allocation4], 1536  }
  0x28   :  { %2210 = vsyncadd [#allocation4], 4294965760 }
  0x29   :  { %2211 = dma.done.wait [#allocation7], 24576  }
  0x2a   :  { %2212 = vsyncadd [#allocation7], 4294942720  ;;  %v1855_v1 = vld [vmem:[#allocation6 + $0x4] ss:$16 sps:$4 sm:$0xff]   ;;  %v1857_v2 = vld [vmem:[#allocation6 + $0xc] ss:$16 sps:$4 sm:$0xff]  }
  0x2b   :  { %1253 = vmatprep.subr.bf16.mxu0 %v1855_v1  ;;  %v1859_v3 = vld [vmem:[#allocation6] ss:$16 sps:$4 sm:$0xff]   ;;  %v1860_v4 = vld [vmem:[#allocation6 + $0x8] ss:$16 sps:$4 sm:$0xff]   ;;  %1382 = vmatprep.subr.bf16.mxu1 %v1857_v2  ;;  %v1861_v5 = vld [vmem:[#allocation6 + $0x24] ss:$16 sps:$4 sm:$0xff]  }
  0x2c   :  { %1254 = vmatpush1.bf16.msra.mxu0 %v1859_v3  ;;  %1383 = vmatpush1.bf16.msra.mxu1 %v1860_v4  ;;  %v1863_v6 = vld [vmem:[#allocation6 + $0x2c] ss:$16 sps:$4 sm:$0xff]   ;;  %v1865_v7 = vld [vmem:[#allocation6 + $0x20] ss:$16 sps:$4 sm:$0xff]   ;;  %v1866_v8 = vld [vmem:[#allocation6 + $0x28] ss:$16 sps:$4 sm:$0xff]  }
  0x2d   :  { %1255 = vmatprep.subr.bf16.mxu0 %v1861_v5  ;;  %1384 = vmatprep.subr.bf16.mxu1 %v1863_v6  ;;  %v1867_v9 = vld [vmem:[#allocation6 + $0x44] ss:$16 sps:$4 sm:$0xff]   ;;  %v1869_v10 = vld [vmem:[#allocation6 + $0x4c] ss:$16 sps:$4 sm:$0xff]   ;;  %v1871_v11 = vld [vmem:[#allocation6 + $0x40] ss:$16 sps:$4 sm:$0xff]  }
  0x2e   :  { %v1872_v12 = vld [vmem:[#allocation6 + $0x48] ss:$16 sps:$4 sm:$0xff]   ;;  %v1873_v13 = vld [vmem:[#allocation6 + $0x64] ss:$16 sps:$4 sm:$0xff]   ;;  %v1875_v14 = vld [vmem:[#allocation6 + $0x6c] ss:$16 sps:$4 sm:$0xff]  }
  0x2f   :  { %v1877_v15 = vld [vmem:[#allocation6 + $0x60] ss:$16 sps:$4 sm:$0xff]   ;;  %v1878_v16 = vld [vmem:[#allocation6 + $0x68] ss:$16 sps:$4 sm:$0xff]   ;;  %v1879_v17 = vld [vmem:[#allocation6 + $0x84] ss:$16 sps:$4 sm:$0xff]  }
  0x30   :  { %1256 = vmatpush1.bf16.msra.mxu0 %v1865_v7  ;;  %1385 = vmatpush1.bf16.msra.mxu1 %v1866_v8  ;;  %v1881_v18 = vld [vmem:[#allocation6 + $0x8c] ss:$16 sps:$4 sm:$0xff]   ;;  %v1883_v19 = vld [vmem:[#allocation6 + $0x80] ss:$16 sps:$4 sm:$0xff]   ;;  %v1884_v20 = vld [vmem:[#allocation6 + $0x88] ss:$16 sps:$4 sm:$0xff]  }
  0x31   :  { %1257 = vmatprep.subr.bf16.mxu0 %v1867_v9  ;;  %1386 = vmatprep.subr.bf16.mxu1 %v1869_v10  ;;  %v1885_v21 = vld [vmem:[#allocation6 + $0xa4] ss:$16 sps:$4 sm:$0xff]   ;;  %v1887_v22 = vld [vmem:[#allocation6 + $0xac] ss:$16 sps:$4 sm:$0xff]   ;;  %v1889_v23 = vld [vmem:[#allocation6 + $0xa0] ss:$16 sps:$4 sm:$0xff]  }
  0x32   :  { %v1890_v24 = vld [vmem:[#allocation6 + $0xa8] ss:$16 sps:$4 sm:$0xff]   ;;  %v1891_v25 = vld [vmem:[#allocation6 + $0xc4] ss:$16 sps:$4 sm:$0xff]   ;;  %v1893_v26 = vld [vmem:[#allocation6 + $0xcc] ss:$16 sps:$4 sm:$0xff]  }
  0x33   :  { %v1895_v27 = vld [vmem:[#allocation6 + $0xc0] ss:$16 sps:$4 sm:$0xff]   ;;  %v1896_v28 = vld [vmem:[#allocation6 + $0xc8] ss:$16 sps:$4 sm:$0xff]   ;;  %v1897_v29 = vld [vmem:[#allocation6 + $0xe4] ss:$16 sps:$4 sm:$0xff]  }
  0x34   :  { %1258 = vmatpush1.bf16.msra.mxu0 %v1871_v11  ;;  %1387 = vmatpush1.bf16.msra.mxu1 %v1872_v12  ;;  %v1899_v30 = vld [vmem:[#allocation6 + $0xec] ss:$16 sps:$4 sm:$0xff]   ;;  %v1901_v31 = vld [vmem:[#allocation6 + $0xe0] ss:$16 sps:$4 sm:$0xff]   ;;  %v1902_v32 = vld [vmem:[#allocation6 + $0xe8] ss:$16 sps:$4 sm:$0xff]  }
  0x35   :  { %1259 = vmatprep.subr.bf16.mxu0 %v1873_v13  ;;  %1388 = vmatprep.subr.bf16.mxu1 %v1875_v14  ;;  %v1903_v33 = vld [vmem:[#allocation6 + $0x104] ss:$16 sps:$4 sm:$0xff]   ;;  %v1905_v34 = vld [vmem:[#allocation6 + $0x10c] ss:$16 sps:$4 sm:$0xff]   ;;  %v1907_v35 = vld [vmem:[#allocation6 + $0x100] ss:$16 sps:$4 sm:$0xff]  }
  0x36   :  { %v1908_v36 = vld [vmem:[#allocation6 + $0x108] ss:$16 sps:$4 sm:$0xff]   ;;  %v1909_v37 = vld [vmem:[#allocation6 + $0x124] ss:$16 sps:$4 sm:$0xff]   ;;  %v1911_v38 = vld [vmem:[#allocation6 + $0x12c] ss:$16 sps:$4 sm:$0xff]  }
  0x37   :  { %v1913_v39 = vld [vmem:[#allocation6 + $0x120] ss:$16 sps:$4 sm:$0xff]   ;;  %v1914_v40 = vld [vmem:[#allocation6 + $0x128] ss:$16 sps:$4 sm:$0xff]   ;;  %v1915_v41 = vld [vmem:[#allocation6 + $0x144] ss:$16 sps:$4 sm:$0xff]  }
  0x38   :  { %1260 = vmatpush1.bf16.msra.mxu0 %v1877_v15  ;;  %1389 = vmatpush1.bf16.msra.mxu1 %v1878_v16  ;;  %v1917_v42 = vld [vmem:[#allocation6 + $0x14c] ss:$16 sps:$4 sm:$0xff]   ;;  %v1919_v43 = vld [vmem:[#allocation6 + $0x140] ss:$16 sps:$4 sm:$0xff]   ;;  %v1920_v44 = vld [vmem:[#allocation6 + $0x148] ss:$16 sps:$4 sm:$0xff]  }
  0x39   :  { %1261 = vmatprep.subr.bf16.mxu0 %v1879_v17  ;;  %1390 = vmatprep.subr.bf16.mxu1 %v1881_v18  ;;  %v1921_v45 = vld [vmem:[#allocation6 + $0x164] ss:$16 sps:$4 sm:$0xff]   ;;  %v1923_v46 = vld [vmem:[#allocation6 + $0x16c] ss:$16 sps:$4 sm:$0xff]   ;;  %v1925_v49 = vld [vmem:[#allocation6 + $0x160] ss:$16 sps:$4 sm:$0xff]  }
  0x3a   :  { %v58_v47 = vld [vmem:[#allocation3 + $0x8] sm:$0xff]  ;;  %v64_v48 = vld [vmem:[#allocation3 + $0x38] sm:$0xff]  ;;  %v1927_v52 = vld [vmem:[#allocation6 + $0x184] ss:$16 sps:$4 sm:$0xff]   ;;  %vm1580_vm0 = vcmask 31744   ;;  %vm1606_vm1 = vcmask 1041409  }
  0x3b   :  { %v1926_v50 = vld [vmem:[#allocation6 + $0x168] ss:$16 sps:$4 sm:$0xff]   ;;  %v70_v51 = vpack.c.bf16 %v64_v48, %v58_v47  ;;  %v1929_v53 = vld [vmem:[#allocation6 + $0x18c] ss:$16 sps:$4 sm:$0xff]   ;;  %v1931_v54 = vld [vmem:[#allocation6 + $0x180] ss:$16 sps:$4 sm:$0xff]  }
  0x3c   :  { %1262 = vmatpush1.bf16.msra.mxu0 %v1883_v19  ;;  %1391 = vmatpush1.bf16.msra.mxu1 %v1884_v20  ;;  %v1932_v55 = vld [vmem:[#allocation6 + $0x188] ss:$16 sps:$4 sm:$0xff]   ;;  %v1933_v56 = vld [vmem:[#allocation6 + $0x1a4] ss:$16 sps:$4 sm:$0xff]   ;;  %v1935_v57 = vld [vmem:[#allocation6 + $0x1ac] ss:$16 sps:$4 sm:$0xff]  }
  0x3d   :  { %1263 = vmatprep.subr.bf16.mxu0 %v1885_v21  ;;  %1392 = vmatprep.subr.bf16.mxu1 %v1887_v22  ;;  %v1937_v58 = vld [vmem:[#allocation6 + $0x1a0] ss:$16 sps:$4 sm:$0xff]   ;;  %v1938_v59 = vld [vmem:[#allocation6 + $0x1a8] ss:$16 sps:$4 sm:$0xff]   ;;  %v1939_v60 = vld [vmem:[#allocation6 + $0x1c4] ss:$16 sps:$4 sm:$0xff]  }
  0x3e   :  { %1285 = vmatprep.mubr.bf16.mxu0 %v70_v51  ;;  %1414 = vmatprep.mubr.bf16.mxu1 %v70_v51  ;;  %v1941_v61 = vld [vmem:[#allocation6 + $0x1cc] ss:$16 sps:$4 sm:$0xff]   ;;  %v1943_v62 = vld [vmem:[#allocation6 + $0x1c0] ss:$16 sps:$4 sm:$0xff]   ;;  %v1944_v63 = vld [vmem:[#allocation6 + $0x1c8] ss:$16 sps:$4 sm:$0xff]  }
  0x3f   :  { %v1945_v0 = vld [vmem:[#allocation6 + $0x1e4] ss:$16 sps:$4 sm:$0xff]   ;;  %v1947_v1 = vld [vmem:[#allocation6 + $0x1ec] ss:$16 sps:$4 sm:$0xff]   ;;  %v1949_v2 = vld [vmem:[#allocation6 + $0x1e0] ss:$16 sps:$4 sm:$0xff]  }
  0x40   :  { %1264 = vmatpush1.bf16.msra.mxu0 %v1889_v23  ;;  %1393 = vmatpush1.bf16.msra.mxu1 %v1890_v24  ;;  %v1950_v3 = vld [vmem:[#allocation6 + $0x1e8] ss:$16 sps:$4 sm:$0xff]   ;;  %v1953_v4 = vld [vmem:[#allocation6 + $0x204] ss:$16 sps:$4 sm:$0xff]   ;;  %v1956_v7 = vld [vmem:[#allocation6 + $0x20c] ss:$16 sps:$4 sm:$0xff]  }
  0x41   :  { %1265 = vmatprep.subr.bf16.mxu0 %v1891_v25  ;;  %1394 = vmatprep.subr.bf16.mxu1 %v1893_v26  ;;  %v57_v5 = vld [vmem:[#allocation3] sm:$0xff]  ;;  %v63_v6 = vld [vmem:[#allocation3 + $0x30] sm:$0xff]  ;;  %v1954_v9 = vld [vmem:[#allocation6 + $0x208] ss:$16 sps:$4 sm:$0xff]   ;;  %vm1609_vm2 = vcmask 25600  }
  0x42   :  { %v1951_v8 = vld [vmem:[#allocation6 + $0x200] ss:$16 sps:$4 sm:$0xff]   ;;  %v69_v10 = vpack.c.bf16 %v63_v6, %v57_v5  ;;  %v1959_v11 = vld [vmem:[#allocation6 + $0x224] ss:$16 sps:$4 sm:$0xff]   ;;  %v1962_v12 = vld [vmem:[#allocation6 + $0x22c] ss:$16 sps:$4 sm:$0xff]  }
  0x43   :  { %v1957_v13 = vld [vmem:[#allocation6 + $0x220] ss:$16 sps:$4 sm:$0xff]   ;;  %v1960_v14 = vld [vmem:[#allocation6 + $0x228] ss:$16 sps:$4 sm:$0xff]   ;;  %v1965_v15 = vld [vmem:[#allocation6 + $0x244] ss:$16 sps:$4 sm:$0xff]  }
  0x44   :  { %1266 = vmatpush1.bf16.msra.mxu0 %v1895_v27  ;;  %1395 = vmatpush1.bf16.msra.mxu1 %v1896_v28  ;;  %v1968_v16 = vld [vmem:[#allocation6 + $0x24c] ss:$16 sps:$4 sm:$0xff]   ;;  %v1963_v17 = vld [vmem:[#allocation6 + $0x240] ss:$16 sps:$4 sm:$0xff]   ;;  %v1966_v18 = vld [vmem:[#allocation6 + $0x248] ss:$16 sps:$4 sm:$0xff]  }
  0x45   :  { %1267 = vmatprep.subr.bf16.mxu0 %v1897_v29  ;;  %1396 = vmatprep.subr.bf16.mxu1 %v1899_v30  ;;  %v1971_v19 = vld [vmem:[#allocation6 + $0x264] ss:$16 sps:$4 sm:$0xff]   ;;  %v1974_v20 = vld [vmem:[#allocation6 + $0x26c] ss:$16 sps:$4 sm:$0xff]   ;;  %v1969_v21 = vld [vmem:[#allocation6 + $0x260] ss:$16 sps:$4 sm:$0xff]  }
  0x46   :  { %v1972_v22 = vld [vmem:[#allocation6 + $0x268] ss:$16 sps:$4 sm:$0xff]   ;;  %v1977_v23 = vld [vmem:[#allocation6 + $0x284] ss:$16 sps:$4 sm:$0xff]   ;;  %v1980_v24 = vld [vmem:[#allocation6 + $0x28c] ss:$16 sps:$4 sm:$0xff]  }
  0x47   :  { %v1975_v25 = vld [vmem:[#allocation6 + $0x280] ss:$16 sps:$4 sm:$0xff]   ;;  %v1978_v26 = vld [vmem:[#allocation6 + $0x288] ss:$16 sps:$4 sm:$0xff]   ;;  %v1983_v27 = vld [vmem:[#allocation6 + $0x2a4] ss:$16 sps:$4 sm:$0xff]  }
  0x48   :  { %1268 = vmatpush1.bf16.msra.mxu0 %v1901_v31  ;;  %1397 = vmatpush1.bf16.msra.mxu1 %v1902_v32  ;;  %v1986_v28 = vld [vmem:[#allocation6 + $0x2ac] ss:$16 sps:$4 sm:$0xff]   ;;  %v1981_v29 = vld [vmem:[#allocation6 + $0x2a0] ss:$16 sps:$4 sm:$0xff]   ;;  %v1984_v30 = vld [vmem:[#allocation6 + $0x2a8] ss:$16 sps:$4 sm:$0xff]  }
  0x49   :  { %1269 = vmatprep.subr.bf16.mxu0 %v1903_v33  ;;  %1398 = vmatprep.subr.bf16.mxu1 %v1905_v34  ;;  %v1989_v31 = vld [vmem:[#allocation6 + $0x2c4] ss:$16 sps:$4 sm:$0xff]   ;;  %v1992_v32 = vld [vmem:[#allocation6 + $0x2cc] ss:$16 sps:$4 sm:$0xff]   ;;  %v2005_v48 = vld [vmem:[#allocation6 + $0x320] ss:$16 sps:$4 sm:$0xff]  }
  0x4a   :  { %v60_v33 = vld [vmem:[#allocation3 + $0x18] sm:$0xff]  ;;  %v66_v34 = vld [vmem:[#allocation3 + $0x48] sm:$0xff]  ;;  %v2043_v6 = vld [vmem:[#allocation6 + $0x3e4] ss:$16 sps:$4 sm:$0xff]  }
  0x4b   :  { %v2010_v47 = vld [vmem:[#allocation6 + $0x32c] ss:$16 sps:$4 sm:$0xff]   ;;  %v2038_v5 = vld [vmem:[#allocation6 + $0x3c8] ss:$16 sps:$4 sm:$0xff]  }
  0x4c   :  { %1270 = vmatpush1.bf16.msra.mxu0 %v1907_v35  ;;  %1399 = vmatpush1.bf16.msra.mxu1 %v1908_v36  ;;  %v1987_v35 = vld [vmem:[#allocation6 + $0x2c0] ss:$16 sps:$4 sm:$0xff]   ;;  %v1990_v36 = vld [vmem:[#allocation6 + $0x2c8] ss:$16 sps:$4 sm:$0xff]   ;;  %v2016_v51 = vld [vmem:[#allocation6 + $0x34c] ss:$16 sps:$4 sm:$0xff]  }
  0x4d   :  { %1271 = vmatprep.subr.bf16.mxu0 %v1909_v37  ;;  %1400 = vmatprep.subr.bf16.mxu1 %v1911_v38  ;;  %v72_v37 = vpack.c.bf16 %v66_v34, %v60_v33  ;;  %v1995_v38 = vld [vmem:[#allocation6 + $0x2e4] ss:$16 sps:$4 sm:$0xff]   ;;  %v2076_v33 = vld [vmem:[#allocation6 + $0x48c] ss:$16 sps:$4 sm:$0xff]   ;;  %v2071_v34 = vld [vmem:[#allocation6 + $0x480] ss:$16 sps:$4 sm:$0xff]  }
  0x50   :  { %1272 = vmatpush1.bf16.msra.mxu0 %v1913_v39  ;;  %1401 = vmatpush1.bf16.msra.mxu1 %v1914_v40  ;;  %v1998_v39 = vld [vmem:[#allocation6 + $0x2ec] ss:$16 sps:$4 sm:$0xff]   ;;  %v1993_v40 = vld [vmem:[#allocation6 + $0x2e0] ss:$16 sps:$4 sm:$0xff]  }
  0x51   :  { %1273 = vmatprep.subr.bf16.mxu0 %v1915_v41  ;;  %1402 = vmatprep.subr.bf16.mxu1 %v1917_v42  ;;  %v1996_v41 = vld [vmem:[#allocation6 + $0x2e8] ss:$16 sps:$4 sm:$0xff]   ;;  %v2001_v42 = vld [vmem:[#allocation6 + $0x304] ss:$16 sps:$4 sm:$0xff]  }
  0x54   :  { %1274 = vmatpush1.bf16.msra.mxu0 %v1919_v43  ;;  %1403 = vmatpush1.bf16.msra.mxu1 %v1920_v44  ;;  %v2004_v43 = vld [vmem:[#allocation6 + $0x30c] ss:$16 sps:$4 sm:$0xff]   ;;  %v1999_v44 = vld [vmem:[#allocation6 + $0x300] ss:$16 sps:$4 sm:$0xff]  }
  0x55   :  { %1275 = vmatprep.subr.bf16.mxu0 %v1921_v45  ;;  %1404 = vmatprep.subr.bf16.mxu1 %v1923_v46  ;;  %v2002_v45 = vld [vmem:[#allocation6 + $0x308] ss:$16 sps:$4 sm:$0xff]   ;;  %v2007_v46 = vld [vmem:[#allocation6 + $0x324] ss:$16 sps:$4 sm:$0xff]  }
  0x58   :  { %1276 = vmatpush1.bf16.msra.mxu0 %v1925_v49  ;;  %1405 = vmatpush1.bf16.msra.mxu1 %v1926_v50  ;;  %v2008_v49 = vld [vmem:[#allocation6 + $0x328] ss:$16 sps:$4 sm:$0xff]   ;;  %v2013_v50 = vld [vmem:[#allocation6 + $0x344] ss:$16 sps:$4 sm:$0xff]  }
  0x59   :  { %1277 = vmatprep.subr.bf16.mxu0 %v1927_v52  ;;  %1406 = vmatprep.subr.bf16.mxu1 %v1929_v53  ;;  %v2011_v52 = vld [vmem:[#allocation6 + $0x340] ss:$16 sps:$4 sm:$0xff]   ;;  %v2014_v53 = vld [vmem:[#allocation6 + $0x348] ss:$16 sps:$4 sm:$0xff]  }
  0x5c   :  { %1278 = vmatpush1.bf16.msra.mxu0 %v1931_v54  ;;  %1407 = vmatpush1.bf16.msra.mxu1 %v1932_v55  ;;  %v2019_v54 = vld [vmem:[#allocation6 + $0x364] ss:$16 sps:$4 sm:$0xff]   ;;  %v2022_v55 = vld [vmem:[#allocation6 + $0x36c] ss:$16 sps:$4 sm:$0xff]  }
  0x5d   :  { %1279 = vmatprep.subr.bf16.mxu0 %v1933_v56  ;;  %1408 = vmatprep.subr.bf16.mxu1 %v1935_v57  ;;  %v2017_v56 = vld [vmem:[#allocation6 + $0x360] ss:$16 sps:$4 sm:$0xff]   ;;  %v2020_v57 = vld [vmem:[#allocation6 + $0x368] ss:$16 sps:$4 sm:$0xff]  }
  0x60   :  { %1280 = vmatpush1.bf16.msra.mxu0 %v1937_v58  ;;  %1409 = vmatpush1.bf16.msra.mxu1 %v1938_v59  ;;  %v2025_v58 = vld [vmem:[#allocation6 + $0x384] ss:$16 sps:$4 sm:$0xff]   ;;  %v2028_v59 = vld [vmem:[#allocation6 + $0x38c] ss:$16 sps:$4 sm:$0xff]  }
  0x61   :  { %1281 = vmatprep.subr.bf16.mxu0 %v1939_v60  ;;  %1410 = vmatprep.subr.bf16.mxu1 %v1941_v61  ;;  %v2023_v60 = vld [vmem:[#allocation6 + $0x380] ss:$16 sps:$4 sm:$0xff]   ;;  %v2026_v61 = vld [vmem:[#allocation6 + $0x388] ss:$16 sps:$4 sm:$0xff]  }
  0x64   :  { %1282 = vmatpush1.bf16.msra.mxu0 %v1943_v62  ;;  %1411 = vmatpush1.bf16.msra.mxu1 %v1944_v63  ;;  %v2031_v62 = vld [vmem:[#allocation6 + $0x3a4] ss:$16 sps:$4 sm:$0xff]   ;;  %v2034_v63 = vld [vmem:[#allocation6 + $0x3ac] ss:$16 sps:$4 sm:$0xff]  }
  0x65   :  { %1283 = vmatprep.subr.bf16.mxu0 %v1945_v0  ;;  %1412 = vmatprep.subr.bf16.mxu1 %v1947_v1  ;;  %v2029_v0 = vld [vmem:[#allocation6 + $0x3a0] ss:$16 sps:$4 sm:$0xff]   ;;  %v2032_v1 = vld [vmem:[#allocation6 + $0x3a8] ss:$16 sps:$4 sm:$0xff]  }
  0x68   :  { %1284 = vmatpush1.bf16.msra.mxu0 %v1949_v2  ;;  %1413 = vmatpush1.bf16.msra.mxu1 %v1950_v3  ;;  %v2037_v2 = vld [vmem:[#allocation6 + $0x3c4] ss:$16 sps:$4 sm:$0xff]   ;;  %v2040_v3 = vld [vmem:[#allocation6 + $0x3cc] ss:$16 sps:$4 sm:$0xff]  }
  0x69   :  { %1296 = vmatprep.subr.bf16.mxu0 %v1953_v4  ;;  %1425 = vmatprep.subr.bf16.mxu1 %v1956_v7  ;;  %v2035_v4 = vld [vmem:[#allocation6 + $0x3c0] ss:$16 sps:$4 sm:$0xff]   ;;  %v2046_v7 = vld [vmem:[#allocation6 + $0x3ec] ss:$16 sps:$4 sm:$0xff]  }
  0x6b   :  { %1286 = vmatmul.mubr.bf16.vlgmr.msra.gmra.mrb[0].mxu0 %v69_v10  ;;  %1415 = vmatmul.mubr.bf16.vlgmr.msra.gmra.mrb[0].mxu1 %v69_v10  ;;  %v2049_v10 = vld [vmem:[#allocation6 + $0x404] ss:$16 sps:$4 sm:$0xff]  }
  0x6c   :  { %1297 = vmatpush1.bf16.msra.mxu0 %v1951_v8  ;;  %1426 = vmatpush1.bf16.msra.mxu1 %v1954_v9  ;;  %v2041_v8 = vld [vmem:[#allocation6 + $0x3e0] ss:$16 sps:$4 sm:$0xff]   ;;  %v2044_v9 = vld [vmem:[#allocation6 + $0x3e8] ss:$16 sps:$4 sm:$0xff]  }
  0x6d   :  { %1298 = vmatprep.subr.bf16.mxu0 %v1959_v11  ;;  %1427 = vmatprep.subr.bf16.mxu1 %v1962_v12  ;;  %v59_v11 = vld [vmem:[#allocation3 + $0x10] sm:$0xff]  ;;  %v65_v12 = vld [vmem:[#allocation3 + $0x40] sm:$0xff] }
  0x6e   :  { %1328 = vmatprep.mubr.bf16.mxu0 %v72_v37  ;;  %1457 = vmatprep.mubr.bf16.mxu1 %v72_v37  ;;  %v2082_v37 = vld [vmem:[#allocation6 + $0x4ac] ss:$16 sps:$4 sm:$0xff]  }
  0x70   :  { %1299 = vmatpush1.bf16.msra.mxu0 %v1957_v13  ;;  %1428 = vmatpush1.bf16.msra.mxu1 %v1960_v14  ;;  %v2052_v13 = vld [vmem:[#allocation6 + $0x40c] ss:$16 sps:$4 sm:$0xff]   ;;  %v2047_v14 = vld [vmem:[#allocation6 + $0x400] ss:$16 sps:$4 sm:$0xff]  }
  0x71   :  { %1300 = vmatprep.subr.bf16.mxu0 %v1965_v15  ;;  %1429 = vmatprep.subr.bf16.mxu1 %v1968_v16  ;;  %v2050_v15 = vld [vmem:[#allocation6 + $0x408] ss:$16 sps:$4 sm:$0xff]   ;;  %v71_v16 = vpack.c.bf16 %v65_v12, %v59_v11  ;;  %v2139_v12 = vld [vmem:[#allocation6 + $0x5e4] ss:$16 sps:$4 sm:$0xff]  }
  0x72   :  { %v2134_v11 = vld [vmem:[#allocation6 + $0x5c8] ss:$16 sps:$4 sm:$0xff]  }
  0x74   :  { %1301 = vmatpush1.bf16.msra.mxu0 %v1963_v17  ;;  %1430 = vmatpush1.bf16.msra.mxu1 %v1966_v18  ;;  %v2055_v17 = vld [vmem:[#allocation6 + $0x424] ss:$16 sps:$4 sm:$0xff]   ;;  %v2058_v18 = vld [vmem:[#allocation6 + $0x42c] ss:$16 sps:$4 sm:$0xff]  }
  0x75   :  { %1302 = vmatprep.subr.bf16.mxu0 %v1971_v19  ;;  %1431 = vmatprep.subr.bf16.mxu1 %v1974_v20  ;;  %v62_v19 = vld [vmem:[#allocation3 + $0x28] sm:$0xff]  ;;  %v68_v20 = vld [vmem:[#allocation3 + $0x58] sm:$0xff] }
  0x78   :  { %1303 = vmatpush1.bf16.msra.mxu0 %v1969_v21  ;;  %1432 = vmatpush1.bf16.msra.mxu1 %v1972_v22  ;;  %v2053_v21 = vld [vmem:[#allocation6 + $0x420] ss:$16 sps:$4 sm:$0xff]   ;;  %v2056_v22 = vld [vmem:[#allocation6 + $0x428] ss:$16 sps:$4 sm:$0xff]  }
  0x79   :  { %1304 = vmatprep.subr.bf16.mxu0 %v1977_v23  ;;  %1433 = vmatprep.subr.bf16.mxu1 %v1980_v24  ;;  %v74_v23 = vpack.c.bf16 %v68_v20, %v62_v19  ;;  %v2061_v24 = vld [vmem:[#allocation6 + $0x444] ss:$16 sps:$4 sm:$0xff]   ;;  %v273_v19 = vlaneseq }
  0x7b   :  { %v274_v20 = vshrl.u32 %v273_v19, 7 }
  0x7c   :  { %1305 = vmatpush1.bf16.msra.mxu0 %v1975_v25  ;;  %1434 = vmatpush1.bf16.msra.mxu1 %v1978_v26  ;;  %v2064_v25 = vld [vmem:[#allocation6 + $0x44c] ss:$16 sps:$4 sm:$0xff]   ;;  %v2059_v26 = vld [vmem:[#allocation6 + $0x440] ss:$16 sps:$4 sm:$0xff]  }
  0x7d   :  { %1306 = vmatprep.subr.bf16.mxu0 %v1983_v27  ;;  %1435 = vmatprep.subr.bf16.mxu1 %v1986_v28  ;;  %v2062_v27 = vld [vmem:[#allocation6 + $0x448] ss:$16 sps:$4 sm:$0xff]   ;;  %v2067_v28 = vld [vmem:[#allocation6 + $0x464] ss:$16 sps:$4 sm:$0xff]  }
  0x80   :  { %1307 = vmatpush1.bf16.msra.mxu0 %v1981_v29  ;;  %1436 = vmatpush1.bf16.msra.mxu1 %v1984_v30  ;;  %v2070_v29 = vld [vmem:[#allocation6 + $0x46c] ss:$16 sps:$4 sm:$0xff]   ;;  %v2065_v30 = vld [vmem:[#allocation6 + $0x460] ss:$16 sps:$4 sm:$0xff]  }
  0x81   :  { %1308 = vmatprep.subr.bf16.mxu0 %v1989_v31  ;;  %1437 = vmatprep.subr.bf16.mxu1 %v1992_v32  ;;  %v2068_v31 = vld [vmem:[#allocation6 + $0x468] ss:$16 sps:$4 sm:$0xff]   ;;  %v2073_v32 = vld [vmem:[#allocation6 + $0x484] ss:$16 sps:$4 sm:$0xff]  }
  0x84   :  { %1309 = vmatpush1.bf16.msra.mxu0 %v1987_v35  ;;  %1438 = vmatpush1.bf16.msra.mxu1 %v1990_v36  ;;  %v2074_v35 = vld [vmem:[#allocation6 + $0x488] ss:$16 sps:$4 sm:$0xff]   ;;  %v2079_v36 = vld [vmem:[#allocation6 + $0x4a4] ss:$16 sps:$4 sm:$0xff]  }
  0x85   :  { %1310 = vmatprep.subr.bf16.mxu0 %v1995_v38  ;;  %1439 = vmatprep.subr.bf16.mxu1 %v1998_v39  ;;  %v2077_v38 = vld [vmem:[#allocation6 + $0x4a0] ss:$16 sps:$4 sm:$0xff]   ;;  %v2080_v39 = vld [vmem:[#allocation6 + $0x4a8] ss:$16 sps:$4 sm:$0xff]  }
  0x88   :  { %1311 = vmatpush1.bf16.msra.mxu0 %v1993_v40  ;;  %1440 = vmatpush1.bf16.msra.mxu1 %v1996_v41  ;;  %v2085_v40 = vld [vmem:[#allocation6 + $0x4c4] ss:$16 sps:$4 sm:$0xff]   ;;  %v2088_v41 = vld [vmem:[#allocation6 + $0x4cc] ss:$16 sps:$4 sm:$0xff]  }
  0x89   :  { %1312 = vmatprep.subr.bf16.mxu0 %v2001_v42  ;;  %1441 = vmatprep.subr.bf16.mxu1 %v2004_v43  ;;  %v2083_v42 = vld [vmem:[#allocation6 + $0x4c0] ss:$16 sps:$4 sm:$0xff]   ;;  %v2086_v43 = vld [vmem:[#allocation6 + $0x4c8] ss:$16 sps:$4 sm:$0xff]  }
  0x8c   :  { %1313 = vmatpush1.bf16.msra.mxu0 %v1999_v44  ;;  %1442 = vmatpush1.bf16.msra.mxu1 %v2002_v45  ;;  %v2091_v44 = vld [vmem:[#allocation6 + $0x4e4] ss:$16 sps:$4 sm:$0xff]   ;;  %v2094_v45 = vld [vmem:[#allocation6 + $0x4ec] ss:$16 sps:$4 sm:$0xff]  }
  0x8d   :  { %1314 = vmatprep.subr.bf16.mxu0 %v2007_v46  ;;  %1443 = vmatprep.subr.bf16.mxu1 %v2010_v47  ;;  %v2089_v46 = vld [vmem:[#allocation6 + $0x4e0] ss:$16 sps:$4 sm:$0xff]   ;;  %v2092_v47 = vld [vmem:[#allocation6 + $0x4e8] ss:$16 sps:$4 sm:$0xff]  }
  0x90   :  { %1315 = vmatpush1.bf16.msra.mxu0 %v2005_v48  ;;  %1444 = vmatpush1.bf16.msra.mxu1 %v2008_v49  ;;  %v2097_v48 = vld [vmem:[#allocation6 + $0x504] ss:$16 sps:$4 sm:$0xff]   ;;  %v2100_v49 = vld [vmem:[#allocation6 + $0x50c] ss:$16 sps:$4 sm:$0xff]  }
  0x91   :  { %1316 = vmatprep.subr.bf16.mxu0 %v2013_v50  ;;  %1445 = vmatprep.subr.bf16.mxu1 %v2016_v51  ;;  %v2095_v50 = vld [vmem:[#allocation6 + $0x500] ss:$16 sps:$4 sm:$0xff]   ;;  %v2098_v51 = vld [vmem:[#allocation6 + $0x508] ss:$16 sps:$4 sm:$0xff]  }
  0x94   :  { %1317 = vmatpush1.bf16.msra.mxu0 %v2011_v52  ;;  %1446 = vmatpush1.bf16.msra.mxu1 %v2014_v53  ;;  %v2103_v52 = vld [vmem:[#allocation6 + $0x524] ss:$16 sps:$4 sm:$0xff]   ;;  %v2106_v53 = vld [vmem:[#allocation6 + $0x52c] ss:$16 sps:$4 sm:$0xff]  }
  0x95   :  { %1318 = vmatprep.subr.bf16.mxu0 %v2019_v54  ;;  %1447 = vmatprep.subr.bf16.mxu1 %v2022_v55  ;;  %v2101_v54 = vld [vmem:[#allocation6 + $0x520] ss:$16 sps:$4 sm:$0xff]   ;;  %v2104_v55 = vld [vmem:[#allocation6 + $0x528] ss:$16 sps:$4 sm:$0xff]  }
  0x98   :  { %1319 = vmatpush1.bf16.msra.mxu0 %v2017_v56  ;;  %1448 = vmatpush1.bf16.msra.mxu1 %v2020_v57  ;;  %v2109_v56 = vld [vmem:[#allocation6 + $0x544] ss:$16 sps:$4 sm:$0xff]   ;;  %v2112_v57 = vld [vmem:[#allocation6 + $0x54c] ss:$16 sps:$4 sm:$0xff]  }
  0x99   :  { %1320 = vmatprep.subr.bf16.mxu0 %v2025_v58  ;;  %1449 = vmatprep.subr.bf16.mxu1 %v2028_v59  ;;  %v2107_v58 = vld [vmem:[#allocation6 + $0x540] ss:$16 sps:$4 sm:$0xff]   ;;  %v2110_v59 = vld [vmem:[#allocation6 + $0x548] ss:$16 sps:$4 sm:$0xff]  }
  0x9c   :  { %1321 = vmatpush1.bf16.msra.mxu0 %v2023_v60  ;;  %1450 = vmatpush1.bf16.msra.mxu1 %v2026_v61  ;;  %v2115_v60 = vld [vmem:[#allocation6 + $0x564] ss:$16 sps:$4 sm:$0xff]   ;;  %v2118_v61 = vld [vmem:[#allocation6 + $0x56c] ss:$16 sps:$4 sm:$0xff]  }
  0x9d   :  { %1322 = vmatprep.subr.bf16.mxu0 %v2031_v62  ;;  %1451 = vmatprep.subr.bf16.mxu1 %v2034_v63  ;;  %v2113_v62 = vld [vmem:[#allocation6 + $0x560] ss:$16 sps:$4 sm:$0xff]   ;;  %v2116_v63 = vld [vmem:[#allocation6 + $0x568] ss:$16 sps:$4 sm:$0xff]  }
  0xa0   :  { %1323 = vmatpush1.bf16.msra.mxu0 %v2029_v0  ;;  %1452 = vmatpush1.bf16.msra.mxu1 %v2032_v1  ;;  %v2121_v0 = vld [vmem:[#allocation6 + $0x584] ss:$16 sps:$4 sm:$0xff]   ;;  %v2124_v1 = vld [vmem:[#allocation6 + $0x58c] ss:$16 sps:$4 sm:$0xff]  }
  0xa1   :  { %1324 = vmatprep.subr.bf16.mxu0 %v2037_v2  ;;  %1453 = vmatprep.subr.bf16.mxu1 %v2040_v3  ;;  %v2119_v2 = vld [vmem:[#allocation6 + $0x580] ss:$16 sps:$4 sm:$0xff]   ;;  %v2122_v3 = vld [vmem:[#allocation6 + $0x588] ss:$16 sps:$4 sm:$0xff]  }
  0xa4   :  { %1325 = vmatpush1.bf16.msra.mxu0 %v2035_v4  ;;  %1454 = vmatpush1.bf16.msra.mxu1 %v2038_v5  ;;  %v2127_v4 = vld [vmem:[#allocation6 + $0x5a4] ss:$16 sps:$4 sm:$0xff]   ;;  %v2130_v5 = vld [vmem:[#allocation6 + $0x5ac] ss:$16 sps:$4 sm:$0xff]  }
  0xa5   :  { %1326 = vmatprep.subr.bf16.mxu0 %v2043_v6  ;;  %1455 = vmatprep.subr.bf16.mxu1 %v2046_v7  ;;  %v2125_v6 = vld [vmem:[#allocation6 + $0x5a0] ss:$16 sps:$4 sm:$0xff]   ;;  %v2128_v7 = vld [vmem:[#allocation6 + $0x5a8] ss:$16 sps:$4 sm:$0xff]  }
  0xa8   :  { %1327 = vmatpush1.bf16.msra.mxu0 %v2041_v8  ;;  %1456 = vmatpush1.bf16.msra.mxu1 %v2044_v9  ;;  %v2133_v8 = vld [vmem:[#allocation6 + $0x5c4] ss:$16 sps:$4 sm:$0xff]   ;;  %v2136_v9 = vld [vmem:[#allocation6 + $0x5cc] ss:$16 sps:$4 sm:$0xff]  }
  0xa9   :  { %1339 = vmatprep.subr.bf16.mxu0 %v2049_v10  ;;  %1468 = vmatprep.subr.bf16.mxu1 %v2052_v13  ;;  %v2131_v10 = vld [vmem:[#allocation6 + $0x5c0] ss:$16 sps:$4 sm:$0xff]   ;;  %v2142_v13 = vld [vmem:[#allocation6 + $0x5ec] ss:$16 sps:$4 sm:$0xff]  }
  0xab   :  { %1329 = vmatmul.mubr.bf16.vlgmr.msra.gmra.mrb[0].mxu0 %v71_v16  ;;  %1458 = vmatmul.mubr.bf16.vlgmr.msra.gmra.mrb[0].mxu1 %v71_v16  ;;  %v61_v16 = vld [vmem:[#allocation3 + $0x20] sm:$0xff] }
  0xac   :  { %1340 = vmatpush1.bf16.msra.mxu0 %v2047_v14  ;;  %1469 = vmatpush1.bf16.msra.mxu1 %v2050_v15  ;;  %v2137_v14 = vld [vmem:[#allocation6 + $0x5e0] ss:$16 sps:$4 sm:$0xff]   ;;  %v2140_v15 = vld [vmem:[#allocation6 + $0x5e8] ss:$16 sps:$4 sm:$0xff]  }
  0xad   :  { %1341 = vmatprep.subr.bf16.mxu0 %v2055_v17  ;;  %1470 = vmatprep.subr.bf16.mxu1 %v2058_v18  ;;  %v67_v17 = vld [vmem:[#allocation3 + $0x50] sm:$0xff] }
  0xae   :  { %1371 = vmatprep.mubr.bf16.mxu0 %v74_v23  ;;  %1500 = vmatprep.mubr.bf16.mxu1 %v74_v23  ;;  %v73_v18 = vpack.c.bf16 %v67_v17, %v61_v16  ;;  %v267_v23 = vld [vmem:[%s2316_s2] sm:$0xf] }
  0xaf   :  { %v270_v17 = vld [vmem:[%s2319_s5] sm:$0xff]  ;;  %s2222_s5 = smov [#allocation8]  }
  0xb0   :  { %1342 = vmatpush1.bf16.msra.mxu0 %v2053_v21  ;;  %1471 = vmatpush1.bf16.msra.mxu1 %v2056_v22  ;;  %v275_v21 = vsub.s32 0, %v274_v20  ;;  %v283_v22 = vsub.s32 2, %v274_v20  ;;  %s1617_s11 = sshll.u32 %s2222_s5, 4  ;;  %s1618_s11 = int_to_ptr.vmem [resolvable:$true] %s1617_s11 }
  0xb1   :  { %1343 = vmatprep.subr.bf16.mxu0 %v2061_v24  ;;  %1472 = vmatprep.subr.bf16.mxu1 %v2064_v25  ;;  %v279_v24 = vsub.s32 1, %v274_v20  ;;  %v287_v25 = vsub.s32 3, %v274_v20  ;;  %s2187_s4 = scalar_lea.vmem %s1618_s11, 32  ;;  %p2192_p3 = scmp.lt.s32.totalorder %s1618_s11, %s1618_s11 }
  0xb2   :  { %p2188_p2 = scmp.ne.s32.totalorder %s1618_s11, %s2187_s4  ;;  %p2193_p4 = scmp.lt.s32.totalorder %s2187_s4, %s2187_s4 }
  0xb4   :  { %1344 = vmatpush1.bf16.msra.mxu0 %v2059_v26  ;;  %1473 = vmatpush1.bf16.msra.mxu1 %v2062_v27  ;;  %v276_v26 = vrot.slane %v267_v23, %v275_v21  ;;  %v284_v27 = vrot.slane %v267_v23, %v283_v22  ;;  %p2194_p5 = por %p2193_p4, %p2192_p3 }
  0xb5   :  { %1345 = vmatprep.subr.bf16.mxu0 %v2067_v28  ;;  %1474 = vmatprep.subr.bf16.mxu1 %v2070_v29  ;;  %v268_v28 = vld [vmem:[%s2317_s3] sm:$0xf]  ;;  %v280_v29 = vrot.slane %v267_v23, %v279_v24 }
  0xb6   :  { %p2195_p6 = pnand %p2194_p5, %p2188_p2 }
  0xb8   :  { %1346 = vmatpush1.bf16.msra.mxu0 %v2065_v30  ;;  %1475 = vmatpush1.bf16.msra.mxu1 %v2068_v31  ;;  %v288_v30 = vrot.slane %v267_v23, %v287_v25 }
  0xb9   :  { %1347 = vmatprep.subr.bf16.mxu0 %v2073_v32  ;;  %1476 = vmatprep.subr.bf16.mxu1 %v2076_v33 }
  0xbc   :  { %1348 = vmatpush1.bf16.msra.mxu0 %v2071_v34  ;;  %1477 = vmatpush1.bf16.msra.mxu1 %v2074_v35  ;;  %v1523_v34 = vrot.slane %v268_v28, %v275_v21 }
  0xbd   :  { %1349 = vmatprep.subr.bf16.mxu0 %v2079_v36  ;;  %1478 = vmatprep.subr.bf16.mxu1 %v2082_v37 }
  0xc0   :  { %1350 = vmatpush1.bf16.msra.mxu0 %v2077_v38  ;;  %1479 = vmatpush1.bf16.msra.mxu1 %v2080_v39  ;;  %v1527_v39 = vrot.slane %v268_v28, %v279_v24 }
  0xc1   :  { %1351 = vmatprep.subr.bf16.mxu0 %v2085_v40  ;;  %1480 = vmatprep.subr.bf16.mxu1 %v2088_v41 }
  0xc4   :  { %1352 = vmatpush1.bf16.msra.mxu0 %v2083_v42  ;;  %1481 = vmatpush1.bf16.msra.mxu1 %v2086_v43 }
  0xc5   :  { %1353 = vmatprep.subr.bf16.mxu0 %v2091_v44  ;;  %1482 = vmatprep.subr.bf16.mxu1 %v2094_v45  ;;  %v1531_v44 = vrot.slane %v268_v28, %v283_v22 }
  0xc8   :  { %1354 = vmatpush1.bf16.msra.mxu0 %v2089_v46  ;;  %1483 = vmatpush1.bf16.msra.mxu1 %v2092_v47 }
  0xc9   :  { %1355 = vmatprep.subr.bf16.mxu0 %v2097_v48  ;;  %1484 = vmatprep.subr.bf16.mxu1 %v2100_v49 }
  0xcc   :  { %1356 = vmatpush1.bf16.msra.mxu0 %v2095_v50  ;;  %1485 = vmatpush1.bf16.msra.mxu1 %v2098_v51 }
  0xcd   :  { %1357 = vmatprep.subr.bf16.mxu0 %v2103_v52  ;;  %1486 = vmatprep.subr.bf16.mxu1 %v2106_v53 }
  0xd0   :  { %1358 = vmatpush1.bf16.msra.mxu0 %v2101_v54  ;;  %1487 = vmatpush1.bf16.msra.mxu1 %v2104_v55  ;;  %v1535_v54 = vrot.slane %v268_v28, %v287_v25 }
  0xd1   :  { %1359 = vmatprep.subr.bf16.mxu0 %v2109_v56  ;;  %1488 = vmatprep.subr.bf16.mxu1 %v2112_v57 }
  0xd4   :  { %1360 = vmatpush1.bf16.msra.mxu0 %v2107_v58  ;;  %1489 = vmatpush1.bf16.msra.mxu1 %v2110_v59 }
  0xd5   :  { %1361 = vmatprep.subr.bf16.mxu0 %v2115_v60  ;;  %1490 = vmatprep.subr.bf16.mxu1 %v2118_v61 }
  0xd8   :  { %1362 = vmatpush1.bf16.msra.mxu0 %v2113_v62  ;;  %1491 = vmatpush1.bf16.msra.mxu1 %v2116_v63 }
  0xd9   :  { %1363 = vmatprep.subr.bf16.mxu0 %v2121_v0  ;;  %1492 = vmatprep.subr.bf16.mxu1 %v2124_v1 }
  0xdc   :  { %1364 = vmatpush1.bf16.msra.mxu0 %v2119_v2  ;;  %1493 = vmatpush1.bf16.msra.mxu1 %v2122_v3 }
  0xdd   :  { %1365 = vmatprep.subr.bf16.mxu0 %v2127_v4  ;;  %1494 = vmatprep.subr.bf16.mxu1 %v2130_v5 }
  0xe0   :  { %1366 = vmatpush1.bf16.msra.mxu0 %v2125_v6  ;;  %1495 = vmatpush1.bf16.msra.mxu1 %v2128_v7 }
  0xe1   :  { %1367 = vmatprep.subr.bf16.mxu0 %v2133_v8  ;;  %1496 = vmatprep.subr.bf16.mxu1 %v2136_v9  ;;  %v2221_v9 = vmov 0  }
  0xe2   :  { %1853 = vset.pattern.permute.xlu1 %v2221_v9  ;;  %1854 = vset.pattern.permute.xlu0 %v2221_v9 }
  0xe4   :  { %1368 = vmatpush1.bf16.msra.mxu0 %v2131_v10  ;;  %1497 = vmatpush1.bf16.msra.mxu1 %v2134_v11  ;;  %v1819_v10 = vld [vmem:[#allocation2] ss:$0 sm:$0xff] }
  0xe5   :  { %1369 = vmatprep.subr.bf16.mxu0 %v2139_v12  ;;  %1498 = vmatprep.subr.bf16.mxu1 %v2142_v13 }
  0xe8   :  { %1370 = vmatpush1.bf16.msra.mxu0 %v2137_v14  ;;  %1499 = vmatpush1.bf16.msra.mxu1 %v2140_v15 }
  0xeb   :  { %1372 = vmatmul.mubr.bf16.vlgmr.msra.gmra.mrb[0].mxu0 %v73_v18  ;;  %1501 = vmatmul.mubr.bf16.vlgmr.msra.gmra.mrb[0].mxu1 %v73_v18 }
 0x1be   :  { %v1373_v31 = vpop.f32.mrb[0].mxu0  ;;  %v1502_v32 = vpop.f32.mrb[0].mxu1 }
 0x1bf   :  { %v1821_v33 = vadd.f32 %v1373_v31, %v276_v26  ;;  %v1825_v35 = vadd.f32 %v1502_v32, %v284_v27  ;;  %v1375_v36 = vpop.f32.mrb[1].mxu0  ;;  %v1504_v37 = vpop.f32.mrb[1].mxu1  ;;  %v1820_v32 = vld [vmem:[%s2320_s6] ss:$0 sm:$0xff] }
 0x1c0   :  { %v1822_v38 = vadd.f32 %v1375_v36, %v280_v29  ;;  %v1826_v40 = vadd.f32 %v1504_v37, %v288_v30  ;;  %v1377_v41 = vpop.f32.mrb[2].mxu0  ;;  %v1506_v42 = vpop.f32.mrb[2].mxu1 }
 0x1c1   :  { %v1511_v43 = vmax.f32 %v1821_v33, 0.0  ;;  %v1823_v45 = vadd.f32 %v1377_v41, %v276_v26  ;;  %v1827_v46 = vadd.f32 %v1506_v42, %v284_v27  ;;  %v1379_v47 = vpop.f32.mrb[3].mxu0  ;;  %v1508_v48 = vpop.f32.mrb[3].mxu1  ;;  %v1513_v49 = vmax.f32 %v1825_v35, 0.0 }
 0x1c2   :  { %v1512_v50 = vmax.f32 %v1822_v38, 0.0  ;;  %v1824_v51 = vadd.f32 %v1379_v47, %v280_v29  ;;  %v1828_v52 = vadd.f32 %v1508_v48, %v288_v30  ;;  %v1514_v57 = vmax.f32 %v1826_v40, 0.0 }
 0x1c3   :  { %v1540_v53 = vmul.f32 %v1523_v34, %v1511_v43  ;;  %v1515_v55 = vmax.f32 %v1823_v45, 0.0  ;;  %v1517_v58 = vmax.f32 %v1827_v46, 0.0  ;;  %v1542_v61 = vmul.f32 %v1531_v44, %v1513_v49 }
 0x1c4   :  { %v1541_v56 = vmul.f32 %v1527_v39, %v1512_v50  ;;  %v1516_v59 = vmax.f32 %v1824_v51, 0.0  ;;  %v1518_v0 = vmax.f32 %v1828_v52, 0.0  ;;  %v1543_v1 = vmul.f32 %v1535_v54, %v1514_v57 }
 0x1c5   :  { %v1544_v60 = vmul.f32 %v1523_v34, %v1515_v55  ;;  %v1546_v2 = vmul.f32 %v1531_v44, %v1517_v58 }
 0x1c6   :  { %v1548_v62 = vadd.f32 %v1541_v56, %v1540_v53  ;;  %v1545_v63 = vmul.f32 %v1527_v39, %v1516_v59  ;;  %v1547_v5 = vmul.f32 %v1535_v54, %v1518_v0 }
 0x1c8   :  { %v1553_v3 = vadd.f32 %v1545_v63, %v1544_v60  ;;  %v1549_v4 = vadd.f32 %v1548_v62, %v1542_v61 }
 0x1ca   :  { %v1554_v6 = vadd.f32 %v1553_v3, %v1546_v2  ;;  %v1550_v7 = vadd.f32 %v1549_v4, %v1543_v1 }
 0x1cc   :  { %v1555_v8 = vadd.f32 %v1554_v6, %v1547_v5 }
 0x1ce   :  { %1556 = vadd.xlane.f32.xlu0 %v1555_v8 }
 0x1d2   :  { %1551 = vadd.xlane.f32.xlu0 %v1550_v7 }
 0x25b   :  { %v1557_v11 = vpop.xlane.xlu0 %1556 }
 0x25c   :  { %v1565_v12 = vadd.f32 %v1819_v10, %v1557_v11 }
 0x25e   :  { %v1567_v13 = vmax.f32 %v1565_v12, 0.0 }
 0x25f   :  { %v1552_v14 = vpop.xlane.xlu0 %1551 }
 0x260   :  { %v1564_v15 = vadd.f32 %v1819_v10, %v1552_v14  ;;  %1575 = vperm.xlu1 %1853, %v1567_v13  }
 0x262   :  { %v1566_v16 = vmax.f32 %v1564_v15, 0.0 }
 0x264   :  { %1570 = vperm.xlu1 %1853, %v1566_v16  }
 0x2df   :  { %v1576_v18 = vpop.permute.xlu1 %1575 }
 0x2e0   :  { %v1579_v19 = vmul.f32 %v1576_v18, %v270_v17 }
 0x2e2   :  { %v1588_v20 = vsel %vm1580_vm0, %v1579_v19, 0.0 }
 0x2e3   :  { %v1589_v21 = vrot.slane %v1588_v20, 4  ;;  %v1571_v22 = vpop.permute.xlu1 %1570 }
 0x2e4   :  { %v1578_v23 = vmul.f32 %v1571_v22, %v270_v17 }
 0x2e5   :  { %v1590_v24 = vadd.f32 %v1589_v21, %v1588_v20 }
 0x2e6   :  { %v1581_v25 = vsel %vm1580_vm0, %v1578_v23, 0.0 }
 0x2e7   :  { %v1591_v26 = vrot.slane %v1590_v24, 2  ;;  %v1582_v27 = vrot.slane %v1581_v25, 4 }
 0x2e9   :  { %v1592_v28 = vadd.f32 %v1591_v26, %v1590_v24  ;;  %v1583_v29 = vadd.f32 %v1582_v27, %v1581_v25 }
 0x2eb   :  { %v1593_v30 = vrot.slane %v1592_v28, 1  ;;  %v1584_v31 = vrot.slane %v1583_v29, 2 }
 0x2ed   :  { %v1594_v33 = vadd.f32 %v1593_v30, %v1592_v28  ;;  %v1585_v34 = vadd.f32 %v1584_v31, %v1583_v29 }
 0x2ef   :  { %v1586_v35 = vrot.slane %v1585_v34, 1  ;;  %v1602_v36 = vadd.f32 %v1820_v32, %v1594_v33 }
 0x2f1   :  { %v1587_v37 = vadd.f32 %v1586_v35, %v1585_v34  ;;  %v1605_v39 = vrot.slane %v1602_v36, 7 }
 0x2f3   :  { %v1601_v38 = vadd.f32 %v1820_v32, %v1587_v37 }
 0x2f5   :  { %v1607_v40 = vsel %vm1606_vm1, %v1605_v39, %v1601_v38 }
 0x2f6   :  { %1610 = vst.msk [vmem:[#allocation8] sm:$0x3] %vm1609_vm2, %v1607_v40 }
 0x2f7   :  { %2198 = shalt.err (!%p2195_p6)
}
 0x2f8   :  { %s2199_s13 = scalar_lea.hbm %s2321_s7, 32 }
 0x2f9   :  { %p2200_p7 = scmp.ne.s32.totalorder %s2321_s7, %s2199_s13  ;;  %p2203_p8 = scmp.lt.u32.totalorder %s2199_s13, %s2321_s7 }
 0x2fb   :  { %p2205_p9 = pnand %p2203_p8, %p2200_p7 }
 0x2fd   :  { %2208 = shalt.err (!%p2205_p9)
}
 0x2fe   :  { %1620 = dma.vmem_to_hbm [thread:$0]  %s1618_s11, 32, %s2321_s7, [#allocation5]  }
 0x2ff   :  { %2213 = dma.done.wait [#allocation5], 32  }
 0x300   :  { %2214 = vsyncadd [#allocation5], 4294967264 }
 0x301   :  { %1624 = vsyncpa [#allocation4], 1 }
 0x302   :  { %1625 = vsyncpa [#allocation7], 1 }
 0x303   :  { %1626 = vsyncpa [#allocation5], 1 }

</bundles_post_ra>
